<compile_context>
chip_gen: v7x
topology: tpu7x:2x2x1
jax: 0.10.0
libtpu: 0.0.40
codegen_flags: <defaults>
</compile_context>

<pallas_src>
import jax
import jax.numpy as jnp
from jax.experimental import pallas as pl
from jax.experimental.pallas import tpu as pltpu

# Hyperparameters implied by the module (small, deterministic).
V = 50          # vocab size (embedding_matrix rows)
V_PAD = 64      # vocab padded for the one-hot MXU gather
E = 32          # input_size (embedding dim)
H = 32          # hidden_size
B = 2           # batch
S = 8           # sequence length
BP = 8          # batch padded to one full sublane tile
RNN_LAYERS = 1  # single LSTM layer


def senti_kernel(tok_ref,             # (S*BP, 1) int32, VMEM (time-major, batch padded)
                 emb_ref,             # (V_PAD, E) zero-padded embedding table, VMEM
                 w_ih_t_ref,          # (E, 4H)  pre-transposed, gate order (i,f,o,g)
                 w_hh_t_ref,          # (H, 4H)  pre-transposed, gate order (i,f,o,g)
                 bias_ref,            # (1, 4H)  b_ih + b_hh, gate order (i,f,o,g)
                 wa_ref,              # (1, H)   fused attention projection wa2 @ wa1
                 w1_t_ref, b1_ref,    # (H, H), (1, H)
                 w2_t_ref, b2_ref,    # (H, 2), (1, 2)
                 out_ref):            # (B, 2)
    sbp = tok_ref.shape[0]            # S * BP
    v_pad = emb_ref.shape[0]
    h_dim = w_hh_t_ref.shape[0]
    bp = BP
    s = sbp // bp

    # ---- One-hot MXU embedding gather (replaces 16 serialized dynamic row loads). ----
    tok = tok_ref[...]                                                  # (S*BP, 1)
    vocab_iota = jax.lax.broadcasted_iota(jnp.int32, (sbp, v_pad), 1)   # (S*BP, V_PAD)
    onehot = (vocab_iota == tok).astype(jnp.float32)                    # exact 0/1 rows
    emb_flat = jnp.dot(onehot, emb_ref[...],
                       preferred_element_type=jnp.float32)              # (S*BP, E)

    # ---- Hoisted input projection: one MXU op covers all timesteps; bias folded. ----
    gates_x = (jnp.dot(emb_flat, w_ih_t_ref[...],
                       preferred_element_type=jnp.float32)
               + bias_ref[...])                                         # (S*BP, 4H)

    w_hh_t = w_hh_t_ref[...]                                            # (H, 4H)

    hh = jnp.zeros((bp, h_dim), jnp.float32)
    cc = jnp.zeros((bp, h_dim), jnp.float32)
    h_steps = []

    # ---- LSTM recurrence (unrolled, short static seq). Gate order: (i, f, o, g). ----
    # Every slice below is an 8-sublane-aligned extract of a (8,128) vreg: unmasked.
    for t in range(s):
        gates = (gates_x[t * bp:(t + 1) * bp, :]
                 + jnp.dot(hh, w_hh_t, preferred_element_type=jnp.float32))   # (BP, 4H)
        sig = jax.nn.sigmoid(gates[:, :3 * h_dim])        # one wide sigmoid: i|f|o
        g_g = jnp.tanh(gates[:, 3 * h_dim:])              # one tanh: g
        i_g = sig[:, :h_dim]
        f_g = sig[:, h_dim:2 * h_dim]
        o_g = sig[:, 2 * h_dim:]
        cc = f_g * cc + i_g * g_g
        hh = o_g * jnp.tanh(cc)
        h_steps.append(hh)

    # ---- Attention (post-loop, off the serial chain). ----
    # Exact fusion: the AttentionHead has no nonlinearity between its two bias-free
    # linears, so score_t = hh_t @ (wa2 @ wa1)^T. The wa broadcast is hoisted once.
    wa_b = jnp.broadcast_to(wa_ref[...], (bp, h_dim))                   # (BP, H), once
    score_cols = [jnp.sum(h * wa_b, axis=-1, keepdims=True)
                  for h in h_steps]                                     # S x (BP, 1)

    # Numerically-stable softmax over the sequence, kept in (BP,1) tiles — no lane
    # concat / lane slices / relayout reshapes.
    m = score_cols[0]
    for c in score_cols[1:]:
        m = jnp.maximum(m, c)
    exps = [jnp.exp(c - m) for c in score_cols]
    denom = exps[0]
    for e in exps[1:]:
        denom = denom + e
    inv = 1.0 / denom                                                   # (BP, 1)

    hidden = jnp.zeros((bp, h_dim), jnp.float32)
    for t in range(s):
        hidden = hidden + (exps[t] * inv) * h_steps[t]                  # (BP, H)

    # ---- Classifier head: Linear(H,H) -> ReLU -> Linear(H,2). ----
    h1 = jnp.maximum(jnp.dot(hidden, w1_t_ref[...],
                             preferred_element_type=jnp.float32) + b1_ref[...], 0.0)
    logits = (jnp.dot(h1, w2_t_ref[...],
                      preferred_element_type=jnp.float32) + b2_ref[...])  # (BP, 2)
    out_ref[...] = logits[:out_ref.shape[0], :]                           # (B, 2)


def prepare_kernel_params(p):
    """One-time (load-time) weight massaging: zero-pad the embedding table to V_PAD rows
    for the one-hot gather, reorder LSTM gate rows (i,f,g,o)->(i,f,o,g), pre-transpose to
    (in,out), fold the two LSTM biases, and algebraically fuse the two bias-free attention
    linears into a single (1, H) vector (exact: no nonlinearity between them)."""
    def reorder(w, axis):
        i_, f_, g_, o_ = jnp.split(w, 4, axis=axis)
        return jnp.concatenate([i_, f_, o_, g_], axis=axis)

    emb = p["embedding"]
    emb_pad = jnp.zeros((V_PAD, emb.shape[1]), jnp.float32).at[:emb.shape[0]].set(emb)

    return {
        "emb": emb_pad,                                   # (V_PAD, E)
        "w_ih_t": reorder(p["w_ih"], 0).T,                # (E, 4H)
        "w_hh_t": reorder(p["w_hh"], 0).T,                # (H, 4H)
        "bias": reorder(p["b_ih"] + p["b_hh"], 1),        # (1, 4H)
        "wa": p["wa2"] @ p["wa1"],                        # (1, H)  == linear2 ∘ linear1
        "w1_t": p["w1"].T,                                # (H, H)
        "b1": p["b1"],                                    # (1, H)
        "w2_t": p["w2"].T,                                # (H, 2)
        "b2": p["b2"],                                    # (1, 2)
    }


@jax.jit
def senti_forward(tokens, kp):
    """Hot path: a few tiny int32 layout ops on the (B,S) token ids + one pallas_call."""
    n_batch, s = tokens.shape
    # Pad batch to BP sublanes (pad rows use token 0 -> bounded garbage, never read back),
    # then lay out time-major so row t*BP + b matches the kernel's gates_x layout.
    tok_pad = jnp.zeros((BP, s), jnp.int32).at[:n_batch, :].set(tokens.astype(jnp.int32))
    tok_col = jnp.transpose(tok_pad).reshape(s * BP, 1)

    args = (tok_col, kp["emb"], kp["w_ih_t"], kp["w_hh_t"], kp["bias"],
            kp["wa"], kp["w1_t"], kp["b1"], kp["w2_t"], kp["b2"])
    return pl.pallas_call(
        senti_kernel,
        out_shape=jax.ShapeDtypeStruct((n_batch, 2), jnp.float32),
        in_specs=[pl.BlockSpec(memory_space=pltpu.MemorySpace.VMEM)] * len(args),
        out_specs=pl.BlockSpec(memory_space=pltpu.MemorySpace.VMEM),
    )(*args)


def senti_forward_ref(tokens, params):
    """Pure-JAX reference mirroring the PyTorch forward (original layouts, gate order
    i,f,g,o, separate attention linears) — checks kernel + weight-prep end to end."""
    emb = params["embedding"][tokens]          # (B, S, E)
    emb = jnp.transpose(emb, (1, 0, 2))        # (S, B, E)
    w_ih_t = params["w_ih"].T
    w_hh_t = params["w_hh"].T
    bias = params["b_ih"] + params["b_hh"]
    h = jnp.zeros((B, H), jnp.float32)
    c = jnp.zeros((B, H), jnp.float32)
    outs = []
    for t in range(S):
        gates = emb[t] @ w_ih_t + h @ w_hh_t + bias
        i_g = jax.nn.sigmoid(gates[:, 0:H])
        f_g = jax.nn.sigmoid(gates[:, H:2 * H])
        g_g = jnp.tanh(gates[:, 2 * H:3 * H])
        o_g = jax.nn.sigmoid(gates[:, 3 * H:4 * H])
        c = f_g * c + i_g * g_g
        h = o_g * jnp.tanh(c)
        outs.append(h)
    seq = jnp.stack(outs, axis=0)                       # (S, B, H)
    out_bsh = jnp.transpose(seq, (1, 0, 2))             # (B, S, H)
    h_att = out_bsh @ params["wa1"].T                   # (B, S, H//2)
    scores = (h_att @ params["wa2"].T)[:, :, 0]         # (B, S)
    probs = jax.nn.softmax(scores, axis=1)
    hidden = jnp.sum(probs[:, :, None] * out_bsh, axis=1)   # (B, H)
    h1 = jnp.maximum(hidden @ params["w1"].T + params["b1"], 0.0)
    return h1 @ params["w2"].T + params["b2"]


def init_params(key):
    ks = jax.random.split(key, 12)
    n = lambda k, shape: (jax.random.normal(k, shape, jnp.float32) * 0.1)
    return {
        "embedding": n(ks[0], (V, E)),
        # nn.LSTM(E, H, 1) weights (PyTorch layout, gate order i,f,g,o)
        "w_ih": n(ks[1], (4 * H, E)),
        "w_hh": n(ks[2], (4 * H, H)),
        "b_ih": n(ks[3], (1, 4 * H)),
        "b_hh": n(ks[4], (1, 4 * H)),
        # AttentionHead(H): Linear(H, H//2, bias=False), Linear(H//2, 1, bias=False)
        "wa1": n(ks[5], (H // 2, H)),
        "wa2": n(ks[6], (1, H // 2)),
        # Classifier: Linear(H, H), Linear(H, 2)
        "w1": n(ks[7], (H, H)),
        "b1": n(ks[8], (1, H)),
        "w2": n(ks[9], (2, H)),
        "b2": n(ks[10], (1, 2)),
    }


if __name__ == "__main__":
    key = jax.random.PRNGKey(0)
    pkey, tkey = jax.random.split(key)
    params = init_params(pkey)
    kparams = prepare_kernel_params(params)   # done once, outside the hot path
    tokens = jax.random.randint(tkey, (B, S), 0, V, dtype=jnp.int32)

    out = jax.block_until_ready(senti_forward(tokens, kparams))
    ref = jax.block_until_ready(senti_forward_ref(tokens, params))

    assert out.shape == (B, 2), out.shape
    assert jnp.allclose(out, ref, atol=1e-5, rtol=1e-5), (out, ref)
    print("KERNEL_OK")
</pallas_src>

<mosaic_0001>
module attributes {stable_mosaic.version = 11 : i64} {
  func.func @senti_kernel(%arg0: memref<64x1xi32, #tpu.memory_space<vmem>>, %arg1: memref<64x32xf32, #tpu.memory_space<vmem>>, %arg2: memref<32x128xf32, #tpu.memory_space<vmem>>, %arg3: memref<32x128xf32, #tpu.memory_space<vmem>>, %arg4: memref<1x128xf32, #tpu.memory_space<vmem>>, %arg5: memref<1x32xf32, #tpu.memory_space<vmem>>, %arg6: memref<32x32xf32, #tpu.memory_space<vmem>>, %arg7: memref<1x32xf32, #tpu.memory_space<vmem>>, %arg8: memref<32x2xf32, #tpu.memory_space<vmem>>, %arg9: memref<1x2xf32, #tpu.memory_space<vmem>>, %arg10: memref<2x2xf32, #tpu.memory_space<vmem>>) attributes {dimension_semantics = [], scalar_prefetch = 0 : i64, scratch_operands = 0 : i64, tpu.core_type = #tpu.core_type<tc>} {
    %c0 = arith.constant 0 : index
    %c0_0 = arith.constant 0 : index
    %0 = vector.load %arg0[%c0, %c0_0] : memref<64x1xi32, #tpu.memory_space<vmem>>, vector<64x1xi32>
    %1 = tpu.iota {dimensions = array<i32: 1>} : vector<64x64xi32>
    %2 = vector.broadcast %0 : vector<64x1xi32> to vector<64x64xi32>
    %3 = arith.cmpi eq, %1, %2 : vector<64x64xi32>
    %4 = arith.extui %3 : vector<64x64xi1> to vector<64x64xi32>
    %5 = arith.sitofp %4 : vector<64x64xi32> to vector<64x64xf32>
    %c0_1 = arith.constant 0 : index
    %c0_2 = arith.constant 0 : index
    %6 = vector.load %arg1[%c0_1, %c0_2] : memref<64x32xf32, #tpu.memory_space<vmem>>, vector<64x32xf32>
    %cst = arith.constant dense<0.000000e+00> : vector<64x32xf32>
    %7 = tpu.matmul %5, %6, %cst {dimension_numbers = #tpu.dot_dimension_numbers<[1], [0], [0], [1], [0, 0, 1, 1], [], []>} : vector<64x64xf32>, vector<64x32xf32>, vector<64x32xf32> -> vector<64x32xf32>
    %c0_3 = arith.constant 0 : index
    %c0_4 = arith.constant 0 : index
    %8 = vector.load %arg2[%c0_3, %c0_4] : memref<32x128xf32, #tpu.memory_space<vmem>>, vector<32x128xf32>
    %cst_5 = arith.constant dense<0.000000e+00> : vector<64x128xf32>
    %9 = tpu.matmul %7, %8, %cst_5 {dimension_numbers = #tpu.dot_dimension_numbers<[1], [0], [0], [1], [0, 0, 1, 1], [], []>} : vector<64x32xf32>, vector<32x128xf32>, vector<64x128xf32> -> vector<64x128xf32>
    %c0_6 = arith.constant 0 : index
    %c0_7 = arith.constant 0 : index
    %10 = vector.load %arg4[%c0_6, %c0_7] : memref<1x128xf32, #tpu.memory_space<vmem>>, vector<1x128xf32>
    %11 = vector.broadcast %10 : vector<1x128xf32> to vector<64x128xf32>
    %12 = arith.addf %9, %11 : vector<64x128xf32>
    %c0_8 = arith.constant 0 : index
    %c0_9 = arith.constant 0 : index
    %13 = vector.load %arg3[%c0_8, %c0_9] : memref<32x128xf32, #tpu.memory_space<vmem>>, vector<32x128xf32>
    %cst_10 = arith.constant 0.000000e+00 : f32
    %14 = vector.broadcast %cst_10 : f32 to vector<8x32xf32>
    %cst_11 = arith.constant 0.000000e+00 : f32
    %15 = vector.broadcast %cst_11 : f32 to vector<8x32xf32>
    %16 = vector.extract_strided_slice %12 {offsets = [0, 0], sizes = [8, 128], strides = [1, 1]} : vector<64x128xf32> to vector<8x128xf32>
    %cst_12 = arith.constant dense<0.000000e+00> : vector<8x128xf32>
    %17 = tpu.matmul %14, %13, %cst_12 {dimension_numbers = #tpu.dot_dimension_numbers<[1], [0], [0], [1], [0, 0, 1, 1], [], []>} : vector<8x32xf32>, vector<32x128xf32>, vector<8x128xf32> -> vector<8x128xf32>
    %18 = arith.addf %16, %17 : vector<8x128xf32>
    %19 = vector.extract_strided_slice %18 {offsets = [0, 0], sizes = [8, 96], strides = [1, 1]} : vector<8x128xf32> to vector<8x96xf32>
    %20 = arith.negf %19 : vector<8x96xf32>
    %21 = math.exp %20 : vector<8x96xf32>
    %cst_13 = arith.constant 1.000000e+00 : f32
    %22 = vector.broadcast %cst_13 : f32 to vector<8x96xf32>
    %23 = arith.addf %22, %21 : vector<8x96xf32>
    %24 = arith.divf %22, %23 : vector<8x96xf32>
    %25 = vector.extract_strided_slice %18 {offsets = [0, 96], sizes = [8, 32], strides = [1, 1]} : vector<8x128xf32> to vector<8x32xf32>
    %26 = math.tanh %25 : vector<8x32xf32>
    %27 = vector.extract_strided_slice %24 {offsets = [0, 0], sizes = [8, 32], strides = [1, 1]} : vector<8x96xf32> to vector<8x32xf32>
    %28 = vector.extract_strided_slice %24 {offsets = [0, 32], sizes = [8, 32], strides = [1, 1]} : vector<8x96xf32> to vector<8x32xf32>
    %29 = vector.extract_strided_slice %24 {offsets = [0, 64], sizes = [8, 32], strides = [1, 1]} : vector<8x96xf32> to vector<8x32xf32>
    %30 = arith.mulf %28, %15 : vector<8x32xf32>
    %31 = arith.mulf %27, %26 : vector<8x32xf32>
    %32 = arith.addf %30, %31 : vector<8x32xf32>
    %33 = math.tanh %32 : vector<8x32xf32>
    %34 = arith.mulf %29, %33 : vector<8x32xf32>
    %35 = vector.extract_strided_slice %12 {offsets = [8, 0], sizes = [8, 128], strides = [1, 1]} : vector<64x128xf32> to vector<8x128xf32>
    %cst_14 = arith.constant dense<0.000000e+00> : vector<8x128xf32>
    %36 = tpu.matmul %34, %13, %cst_14 {dimension_numbers = #tpu.dot_dimension_numbers<[1], [0], [0], [1], [0, 0, 1, 1], [], []>} : vector<8x32xf32>, vector<32x128xf32>, vector<8x128xf32> -> vector<8x128xf32>
    %37 = arith.addf %35, %36 : vector<8x128xf32>
    %38 = vector.extract_strided_slice %37 {offsets = [0, 0], sizes = [8, 96], strides = [1, 1]} : vector<8x128xf32> to vector<8x96xf32>
    %39 = arith.negf %38 : vector<8x96xf32>
    %40 = math.exp %39 : vector<8x96xf32>
    %cst_15 = arith.constant 1.000000e+00 : f32
    %41 = vector.broadcast %cst_15 : f32 to vector<8x96xf32>
    %42 = arith.addf %41, %40 : vector<8x96xf32>
    %43 = arith.divf %41, %42 : vector<8x96xf32>
    %44 = vector.extract_strided_slice %37 {offsets = [0, 96], sizes = [8, 32], strides = [1, 1]} : vector<8x128xf32> to vector<8x32xf32>
    %45 = math.tanh %44 : vector<8x32xf32>
    %46 = vector.extract_strided_slice %43 {offsets = [0, 0], sizes = [8, 32], strides = [1, 1]} : vector<8x96xf32> to vector<8x32xf32>
    %47 = vector.extract_strided_slice %43 {offsets = [0, 32], sizes = [8, 32], strides = [1, 1]} : vector<8x96xf32> to vector<8x32xf32>
    %48 = vector.extract_strided_slice %43 {offsets = [0, 64], sizes = [8, 32], strides = [1, 1]} : vector<8x96xf32> to vector<8x32xf32>
    %49 = arith.mulf %47, %32 : vector<8x32xf32>
    %50 = arith.mulf %46, %45 : vector<8x32xf32>
    %51 = arith.addf %49, %50 : vector<8x32xf32>
    %52 = math.tanh %51 : vector<8x32xf32>
    %53 = arith.mulf %48, %52 : vector<8x32xf32>
    %54 = vector.extract_strided_slice %12 {offsets = [16, 0], sizes = [8, 128], strides = [1, 1]} : vector<64x128xf32> to vector<8x128xf32>
    %cst_16 = arith.constant dense<0.000000e+00> : vector<8x128xf32>
    %55 = tpu.matmul %53, %13, %cst_16 {dimension_numbers = #tpu.dot_dimension_numbers<[1], [0], [0], [1], [0, 0, 1, 1], [], []>} : vector<8x32xf32>, vector<32x128xf32>, vector<8x128xf32> -> vector<8x128xf32>
    %56 = arith.addf %54, %55 : vector<8x128xf32>
    %57 = vector.extract_strided_slice %56 {offsets = [0, 0], sizes = [8, 96], strides = [1, 1]} : vector<8x128xf32> to vector<8x96xf32>
    %58 = arith.negf %57 : vector<8x96xf32>
    %59 = math.exp %58 : vector<8x96xf32>
    %cst_17 = arith.constant 1.000000e+00 : f32
    %60 = vector.broadcast %cst_17 : f32 to vector<8x96xf32>
    %61 = arith.addf %60, %59 : vector<8x96xf32>
    %62 = arith.divf %60, %61 : vector<8x96xf32>
    %63 = vector.extract_strided_slice %56 {offsets = [0, 96], sizes = [8, 32], strides = [1, 1]} : vector<8x128xf32> to vector<8x32xf32>
    %64 = math.tanh %63 : vector<8x32xf32>
    %65 = vector.extract_strided_slice %62 {offsets = [0, 0], sizes = [8, 32], strides = [1, 1]} : vector<8x96xf32> to vector<8x32xf32>
    %66 = vector.extract_strided_slice %62 {offsets = [0, 32], sizes = [8, 32], strides = [1, 1]} : vector<8x96xf32> to vector<8x32xf32>
    %67 = vector.extract_strided_slice %62 {offsets = [0, 64], sizes = [8, 32], strides = [1, 1]} : vector<8x96xf32> to vector<8x32xf32>
    %68 = arith.mulf %66, %51 : vector<8x32xf32>
    %69 = arith.mulf %65, %64 : vector<8x32xf32>
    %70 = arith.addf %68, %69 : vector<8x32xf32>
    %71 = math.tanh %70 : vector<8x32xf32>
    %72 = arith.mulf %67, %71 : vector<8x32xf32>
    %73 = vector.extract_strided_slice %12 {offsets = [24, 0], sizes = [8, 128], strides = [1, 1]} : vector<64x128xf32> to vector<8x128xf32>
    %cst_18 = arith.constant dense<0.000000e+00> : vector<8x128xf32>
    %74 = tpu.matmul %72, %13, %cst_18 {dimension_numbers = #tpu.dot_dimension_numbers<[1], [0], [0], [1], [0, 0, 1, 1], [], []>} : vector<8x32xf32>, vector<32x128xf32>, vector<8x128xf32> -> vector<8x128xf32>
    %75 = arith.addf %73, %74 : vector<8x128xf32>
    %76 = vector.extract_strided_slice %75 {offsets = [0, 0], sizes = [8, 96], strides = [1, 1]} : vector<8x128xf32> to vector<8x96xf32>
    %77 = arith.negf %76 : vector<8x96xf32>
    %78 = math.exp %77 : vector<8x96xf32>
    %cst_19 = arith.constant 1.000000e+00 : f32
    %79 = vector.broadcast %cst_19 : f32 to vector<8x96xf32>
    %80 = arith.addf %79, %78 : vector<8x96xf32>
    %81 = arith.divf %79, %80 : vector<8x96xf32>
    %82 = vector.extract_strided_slice %75 {offsets = [0, 96], sizes = [8, 32], strides = [1, 1]} : vector<8x128xf32> to vector<8x32xf32>
    %83 = math.tanh %82 : vector<8x32xf32>
    %84 = vector.extract_strided_slice %81 {offsets = [0, 0], sizes = [8, 32], strides = [1, 1]} : vector<8x96xf32> to vector<8x32xf32>
    %85 = vector.extract_strided_slice %81 {offsets = [0, 32], sizes = [8, 32], strides = [1, 1]} : vector<8x96xf32> to vector<8x32xf32>
    %86 = vector.extract_strided_slice %81 {offsets = [0, 64], sizes = [8, 32], strides = [1, 1]} : vector<8x96xf32> to vector<8x32xf32>
    %87 = arith.mulf %85, %70 : vector<8x32xf32>
    %88 = arith.mulf %84, %83 : vector<8x32xf32>
    %89 = arith.addf %87, %88 : vector<8x32xf32>
    %90 = math.tanh %89 : vector<8x32xf32>
    %91 = arith.mulf %86, %90 : vector<8x32xf32>
    %92 = vector.extract_strided_slice %12 {offsets = [32, 0], sizes = [8, 128], strides = [1, 1]} : vector<64x128xf32> to vector<8x128xf32>
    %cst_20 = arith.constant dense<0.000000e+00> : vector<8x128xf32>
    %93 = tpu.matmul %91, %13, %cst_20 {dimension_numbers = #tpu.dot_dimension_numbers<[1], [0], [0], [1], [0, 0, 1, 1], [], []>} : vector<8x32xf32>, vector<32x128xf32>, vector<8x128xf32> -> vector<8x128xf32>
    %94 = arith.addf %92, %93 : vector<8x128xf32>
    %95 = vector.extract_strided_slice %94 {offsets = [0, 0], sizes = [8, 96], strides = [1, 1]} : vector<8x128xf32> to vector<8x96xf32>
    %96 = arith.negf %95 : vector<8x96xf32>
    %97 = math.exp %96 : vector<8x96xf32>
    %cst_21 = arith.constant 1.000000e+00 : f32
    %98 = vector.broadcast %cst_21 : f32 to vector<8x96xf32>
    %99 = arith.addf %98, %97 : vector<8x96xf32>
    %100 = arith.divf %98, %99 : vector<8x96xf32>
    %101 = vector.extract_strided_slice %94 {offsets = [0, 96], sizes = [8, 32], strides = [1, 1]} : vector<8x128xf32> to vector<8x32xf32>
    %102 = math.tanh %101 : vector<8x32xf32>
    %103 = vector.extract_strided_slice %100 {offsets = [0, 0], sizes = [8, 32], strides = [1, 1]} : vector<8x96xf32> to vector<8x32xf32>
    %104 = vector.extract_strided_slice %100 {offsets = [0, 32], sizes = [8, 32], strides = [1, 1]} : vector<8x96xf32> to vector<8x32xf32>
    %105 = vector.extract_strided_slice %100 {offsets = [0, 64], sizes = [8, 32], strides = [1, 1]} : vector<8x96xf32> to vector<8x32xf32>
    %106 = arith.mulf %104, %89 : vector<8x32xf32>
    %107 = arith.mulf %103, %102 : vector<8x32xf32>
    %108 = arith.addf %106, %107 : vector<8x32xf32>
    %109 = math.tanh %108 : vector<8x32xf32>
    %110 = arith.mulf %105, %109 : vector<8x32xf32>
    %111 = vector.extract_strided_slice %12 {offsets = [40, 0], sizes = [8, 128], strides = [1, 1]} : vector<64x128xf32> to vector<8x128xf32>
    %cst_22 = arith.constant dense<0.000000e+00> : vector<8x128xf32>
    %112 = tpu.matmul %110, %13, %cst_22 {dimension_numbers = #tpu.dot_dimension_numbers<[1], [0], [0], [1], [0, 0, 1, 1], [], []>} : vector<8x32xf32>, vector<32x128xf32>, vector<8x128xf32> -> vector<8x128xf32>
    %113 = arith.addf %111, %112 : vector<8x128xf32>
    %114 = vector.extract_strided_slice %113 {offsets = [0, 0], sizes = [8, 96], strides = [1, 1]} : vector<8x128xf32> to vector<8x96xf32>
    %115 = arith.negf %114 : vector<8x96xf32>
    %116 = math.exp %115 : vector<8x96xf32>
    %cst_23 = arith.constant 1.000000e+00 : f32
    %117 = vector.broadcast %cst_23 : f32 to vector<8x96xf32>
    %118 = arith.addf %117, %116 : vector<8x96xf32>
    %119 = arith.divf %117, %118 : vector<8x96xf32>
    %120 = vector.extract_strided_slice %113 {offsets = [0, 96], sizes = [8, 32], strides = [1, 1]} : vector<8x128xf32> to vector<8x32xf32>
    %121 = math.tanh %120 : vector<8x32xf32>
    %122 = vector.extract_strided_slice %119 {offsets = [0, 0], sizes = [8, 32], strides = [1, 1]} : vector<8x96xf32> to vector<8x32xf32>
    %123 = vector.extract_strided_slice %119 {offsets = [0, 32], sizes = [8, 32], strides = [1, 1]} : vector<8x96xf32> to vector<8x32xf32>
    %124 = vector.extract_strided_slice %119 {offsets = [0, 64], sizes = [8, 32], strides = [1, 1]} : vector<8x96xf32> to vector<8x32xf32>
    %125 = arith.mulf %123, %108 : vector<8x32xf32>
    %126 = arith.mulf %122, %121 : vector<8x32xf32>
    %127 = arith.addf %125, %126 : vector<8x32xf32>
    %128 = math.tanh %127 : vector<8x32xf32>
    %129 = arith.mulf %124, %128 : vector<8x32xf32>
    %130 = vector.extract_strided_slice %12 {offsets = [48, 0], sizes = [8, 128], strides = [1, 1]} : vector<64x128xf32> to vector<8x128xf32>
    %cst_24 = arith.constant dense<0.000000e+00> : vector<8x128xf32>
    %131 = tpu.matmul %129, %13, %cst_24 {dimension_numbers = #tpu.dot_dimension_numbers<[1], [0], [0], [1], [0, 0, 1, 1], [], []>} : vector<8x32xf32>, vector<32x128xf32>, vector<8x128xf32> -> vector<8x128xf32>
    %132 = arith.addf %130, %131 : vector<8x128xf32>
    %133 = vector.extract_strided_slice %132 {offsets = [0, 0], sizes = [8, 96], strides = [1, 1]} : vector<8x128xf32> to vector<8x96xf32>
    %134 = arith.negf %133 : vector<8x96xf32>
    %135 = math.exp %134 : vector<8x96xf32>
    %cst_25 = arith.constant 1.000000e+00 : f32
    %136 = vector.broadcast %cst_25 : f32 to vector<8x96xf32>
    %137 = arith.addf %136, %135 : vector<8x96xf32>
    %138 = arith.divf %136, %137 : vector<8x96xf32>
    %139 = vector.extract_strided_slice %132 {offsets = [0, 96], sizes = [8, 32], strides = [1, 1]} : vector<8x128xf32> to vector<8x32xf32>
    %140 = math.tanh %139 : vector<8x32xf32>
    %141 = vector.extract_strided_slice %138 {offsets = [0, 0], sizes = [8, 32], strides = [1, 1]} : vector<8x96xf32> to vector<8x32xf32>
    %142 = vector.extract_strided_slice %138 {offsets = [0, 32], sizes = [8, 32], strides = [1, 1]} : vector<8x96xf32> to vector<8x32xf32>
    %143 = vector.extract_strided_slice %138 {offsets = [0, 64], sizes = [8, 32], strides = [1, 1]} : vector<8x96xf32> to vector<8x32xf32>
    %144 = arith.mulf %142, %127 : vector<8x32xf32>
    %145 = arith.mulf %141, %140 : vector<8x32xf32>
    %146 = arith.addf %144, %145 : vector<8x32xf32>
    %147 = math.tanh %146 : vector<8x32xf32>
    %148 = arith.mulf %143, %147 : vector<8x32xf32>
    %149 = vector.extract_strided_slice %12 {offsets = [56, 0], sizes = [8, 128], strides = [1, 1]} : vector<64x128xf32> to vector<8x128xf32>
    %cst_26 = arith.constant dense<0.000000e+00> : vector<8x128xf32>
    %150 = tpu.matmul %148, %13, %cst_26 {dimension_numbers = #tpu.dot_dimension_numbers<[1], [0], [0], [1], [0, 0, 1, 1], [], []>} : vector<8x32xf32>, vector<32x128xf32>, vector<8x128xf32> -> vector<8x128xf32>
    %151 = arith.addf %149, %150 : vector<8x128xf32>
    %152 = vector.extract_strided_slice %151 {offsets = [0, 0], sizes = [8, 96], strides = [1, 1]} : vector<8x128xf32> to vector<8x96xf32>
    %153 = arith.negf %152 : vector<8x96xf32>
    %154 = math.exp %153 : vector<8x96xf32>
    %cst_27 = arith.constant 1.000000e+00 : f32
    %155 = vector.broadcast %cst_27 : f32 to vector<8x96xf32>
    %156 = arith.addf %155, %154 : vector<8x96xf32>
    %157 = arith.divf %155, %156 : vector<8x96xf32>
    %158 = vector.extract_strided_slice %151 {offsets = [0, 96], sizes = [8, 32], strides = [1, 1]} : vector<8x128xf32> to vector<8x32xf32>
    %159 = math.tanh %158 : vector<8x32xf32>
    %160 = vector.extract_strided_slice %157 {offsets = [0, 0], sizes = [8, 32], strides = [1, 1]} : vector<8x96xf32> to vector<8x32xf32>
    %161 = vector.extract_strided_slice %157 {offsets = [0, 32], sizes = [8, 32], strides = [1, 1]} : vector<8x96xf32> to vector<8x32xf32>
    %162 = vector.extract_strided_slice %157 {offsets = [0, 64], sizes = [8, 32], strides = [1, 1]} : vector<8x96xf32> to vector<8x32xf32>
    %163 = arith.mulf %161, %146 : vector<8x32xf32>
    %164 = arith.mulf %160, %159 : vector<8x32xf32>
    %165 = arith.addf %163, %164 : vector<8x32xf32>
    %166 = math.tanh %165 : vector<8x32xf32>
    %167 = arith.mulf %162, %166 : vector<8x32xf32>
    %c0_28 = arith.constant 0 : index
    %c0_29 = arith.constant 0 : index
    %168 = vector.load %arg5[%c0_28, %c0_29] : memref<1x32xf32, #tpu.memory_space<vmem>>, vector<1x32xf32>
    %169 = vector.shape_cast %168 : vector<1x32xf32> to vector<1x32xf32>
    %170 = vector.broadcast %169 : vector<1x32xf32> to vector<8x32xf32>
    %171 = arith.mulf %34, %170 : vector<8x32xf32>
    %cst_30 = arith.constant dense<0.000000e+00> : vector<8xf32>
    %172 = vector.multi_reduction <add>, %171, %cst_30 [1] : vector<8x32xf32> to vector<8xf32>
    %173 = vector.shape_cast %172 : vector<8xf32> to vector<8x1xf32>
    %174 = arith.mulf %53, %170 : vector<8x32xf32>
    %cst_31 = arith.constant dense<0.000000e+00> : vector<8xf32>
    %175 = vector.multi_reduction <add>, %174, %cst_31 [1] : vector<8x32xf32> to vector<8xf32>
    %176 = vector.shape_cast %175 : vector<8xf32> to vector<8x1xf32>
    %177 = arith.mulf %72, %170 : vector<8x32xf32>
    %cst_32 = arith.constant dense<0.000000e+00> : vector<8xf32>
    %178 = vector.multi_reduction <add>, %177, %cst_32 [1] : vector<8x32xf32> to vector<8xf32>
    %179 = vector.shape_cast %178 : vector<8xf32> to vector<8x1xf32>
    %180 = arith.mulf %91, %170 : vector<8x32xf32>
    %cst_33 = arith.constant dense<0.000000e+00> : vector<8xf32>
    %181 = vector.multi_reduction <add>, %180, %cst_33 [1] : vector<8x32xf32> to vector<8xf32>
    %182 = vector.shape_cast %181 : vector<8xf32> to vector<8x1xf32>
    %183 = arith.mulf %110, %170 : vector<8x32xf32>
    %cst_34 = arith.constant dense<0.000000e+00> : vector<8xf32>
    %184 = vector.multi_reduction <add>, %183, %cst_34 [1] : vector<8x32xf32> to vector<8xf32>
    %185 = vector.shape_cast %184 : vector<8xf32> to vector<8x1xf32>
    %186 = arith.mulf %129, %170 : vector<8x32xf32>
    %cst_35 = arith.constant dense<0.000000e+00> : vector<8xf32>
    %187 = vector.multi_reduction <add>, %186, %cst_35 [1] : vector<8x32xf32> to vector<8xf32>
    %188 = vector.shape_cast %187 : vector<8xf32> to vector<8x1xf32>
    %189 = arith.mulf %148, %170 : vector<8x32xf32>
    %cst_36 = arith.constant dense<0.000000e+00> : vector<8xf32>
    %190 = vector.multi_reduction <add>, %189, %cst_36 [1] : vector<8x32xf32> to vector<8xf32>
    %191 = vector.shape_cast %190 : vector<8xf32> to vector<8x1xf32>
    %192 = arith.mulf %167, %170 : vector<8x32xf32>
    %cst_37 = arith.constant dense<0.000000e+00> : vector<8xf32>
    %193 = vector.multi_reduction <add>, %192, %cst_37 [1] : vector<8x32xf32> to vector<8xf32>
    %194 = vector.shape_cast %193 : vector<8xf32> to vector<8x1xf32>
    %195 = arith.maximumf %173, %176 : vector<8x1xf32>
    %196 = arith.maximumf %195, %179 : vector<8x1xf32>
    %197 = arith.maximumf %196, %182 : vector<8x1xf32>
    %198 = arith.maximumf %197, %185 : vector<8x1xf32>
    %199 = arith.maximumf %198, %188 : vector<8x1xf32>
    %200 = arith.maximumf %199, %191 : vector<8x1xf32>
    %201 = arith.maximumf %200, %194 : vector<8x1xf32>
    %202 = arith.subf %173, %201 : vector<8x1xf32>
    %203 = math.exp %202 : vector<8x1xf32>
    %204 = arith.subf %176, %201 : vector<8x1xf32>
    %205 = math.exp %204 : vector<8x1xf32>
    %206 = arith.subf %179, %201 : vector<8x1xf32>
    %207 = math.exp %206 : vector<8x1xf32>
    %208 = arith.subf %182, %201 : vector<8x1xf32>
    %209 = math.exp %208 : vector<8x1xf32>
    %210 = arith.subf %185, %201 : vector<8x1xf32>
    %211 = math.exp %210 : vector<8x1xf32>
    %212 = arith.subf %188, %201 : vector<8x1xf32>
    %213 = math.exp %212 : vector<8x1xf32>
    %214 = arith.subf %191, %201 : vector<8x1xf32>
    %215 = math.exp %214 : vector<8x1xf32>
    %216 = arith.subf %194, %201 : vector<8x1xf32>
    %217 = math.exp %216 : vector<8x1xf32>
    %218 = arith.addf %203, %205 : vector<8x1xf32>
    %219 = arith.addf %218, %207 : vector<8x1xf32>
    %220 = arith.addf %219, %209 : vector<8x1xf32>
    %221 = arith.addf %220, %211 : vector<8x1xf32>
    %222 = arith.addf %221, %213 : vector<8x1xf32>
    %223 = arith.addf %222, %215 : vector<8x1xf32>
    %224 = arith.addf %223, %217 : vector<8x1xf32>
    %cst_38 = arith.constant 1.000000e+00 : f32
    %225 = vector.broadcast %cst_38 : f32 to vector<8x1xf32>
    %226 = arith.divf %225, %224 : vector<8x1xf32>
    %cst_39 = arith.constant 0.000000e+00 : f32
    %227 = vector.broadcast %cst_39 : f32 to vector<8x32xf32>
    %228 = arith.mulf %203, %226 : vector<8x1xf32>
    %229 = vector.broadcast %228 : vector<8x1xf32> to vector<8x32xf32>
    %230 = arith.mulf %229, %34 : vector<8x32xf32>
    %231 = arith.addf %227, %230 : vector<8x32xf32>
    %232 = arith.mulf %205, %226 : vector<8x1xf32>
    %233 = vector.broadcast %232 : vector<8x1xf32> to vector<8x32xf32>
    %234 = arith.mulf %233, %53 : vector<8x32xf32>
    %235 = arith.addf %231, %234 : vector<8x32xf32>
    %236 = arith.mulf %207, %226 : vector<8x1xf32>
    %237 = vector.broadcast %236 : vector<8x1xf32> to vector<8x32xf32>
    %238 = arith.mulf %237, %72 : vector<8x32xf32>
    %239 = arith.addf %235, %238 : vector<8x32xf32>
    %240 = arith.mulf %209, %226 : vector<8x1xf32>
    %241 = vector.broadcast %240 : vector<8x1xf32> to vector<8x32xf32>
    %242 = arith.mulf %241, %91 : vector<8x32xf32>
    %243 = arith.addf %239, %242 : vector<8x32xf32>
    %244 = arith.mulf %211, %226 : vector<8x1xf32>
    %245 = vector.broadcast %244 : vector<8x1xf32> to vector<8x32xf32>
    %246 = arith.mulf %245, %110 : vector<8x32xf32>
    %247 = arith.addf %243, %246 : vector<8x32xf32>
    %248 = arith.mulf %213, %226 : vector<8x1xf32>
    %249 = vector.broadcast %248 : vector<8x1xf32> to vector<8x32xf32>
    %250 = arith.mulf %249, %129 : vector<8x32xf32>
    %251 = arith.addf %247, %250 : vector<8x32xf32>
    %252 = arith.mulf %215, %226 : vector<8x1xf32>
    %253 = vector.broadcast %252 : vector<8x1xf32> to vector<8x32xf32>
    %254 = arith.mulf %253, %148 : vector<8x32xf32>
    %255 = arith.addf %251, %254 : vector<8x32xf32>
    %256 = arith.mulf %217, %226 : vector<8x1xf32>
    %257 = vector.broadcast %256 : vector<8x1xf32> to vector<8x32xf32>
    %258 = arith.mulf %257, %167 : vector<8x32xf32>
    %259 = arith.addf %255, %258 : vector<8x32xf32>
    %c0_40 = arith.constant 0 : index
    %c0_41 = arith.constant 0 : index
    %260 = vector.load %arg6[%c0_40, %c0_41] : memref<32x32xf32, #tpu.memory_space<vmem>>, vector<32x32xf32>
    %cst_42 = arith.constant dense<0.000000e+00> : vector<8x32xf32>
    %261 = tpu.matmul %259, %260, %cst_42 {dimension_numbers = #tpu.dot_dimension_numbers<[1], [0], [0], [1], [0, 0, 1, 1], [], []>} : vector<8x32xf32>, vector<32x32xf32>, vector<8x32xf32> -> vector<8x32xf32>
    %c0_43 = arith.constant 0 : index
    %c0_44 = arith.constant 0 : index
    %262 = vector.load %arg7[%c0_43, %c0_44] : memref<1x32xf32, #tpu.memory_space<vmem>>, vector<1x32xf32>
    %263 = vector.broadcast %262 : vector<1x32xf32> to vector<8x32xf32>
    %264 = arith.addf %261, %263 : vector<8x32xf32>
    %cst_45 = arith.constant 0.000000e+00 : f32
    %265 = vector.broadcast %cst_45 : f32 to vector<8x32xf32>
    %266 = arith.maximumf %264, %265 : vector<8x32xf32>
    %c0_46 = arith.constant 0 : index
    %c0_47 = arith.constant 0 : index
    %267 = vector.load %arg8[%c0_46, %c0_47] : memref<32x2xf32, #tpu.memory_space<vmem>>, vector<32x2xf32>
    %cst_48 = arith.constant dense<0.000000e+00> : vector<8x2xf32>
    %268 = tpu.matmul %266, %267, %cst_48 {dimension_numbers = #tpu.dot_dimension_numbers<[1], [0], [0], [1], [0, 0, 1, 1], [], []>} : vector<8x32xf32>, vector<32x2xf32>, vector<8x2xf32> -> vector<8x2xf32>
    %c0_49 = arith.constant 0 : index
    %c0_50 = arith.constant 0 : index
    %269 = vector.load %arg9[%c0_49, %c0_50] : memref<1x2xf32, #tpu.memory_space<vmem>>, vector<1x2xf32>
    %270 = vector.broadcast %269 : vector<1x2xf32> to vector<8x2xf32>
    %271 = arith.addf %268, %270 : vector<8x2xf32>
    %272 = vector.extract_strided_slice %271 {offsets = [0, 0], sizes = [2, 2], strides = [1, 1]} : vector<8x2xf32> to vector<2x2xf32>
    %c0_51 = arith.constant 0 : index
    %c0_52 = arith.constant 0 : index
    %273 = vector.load %arg10[%c0_51, %c0_52] : memref<2x2xf32, #tpu.memory_space<vmem>>, vector<2x2xf32>
    tpu.vector_store %arg10[%c0_51, %c0_52], %272 {strides = array<i32>} : memref<2x2xf32, #tpu.memory_space<vmem>>, vector<2x2xf32>,
    return
  }
}

</mosaic_0001>

<bundles_post_ra>
// kernel: senti_forward.1
= control target key start
LH: loop header
LB: loop body
LE: loop exit
PB: predicated region body
PF: predicated region fallthrough
CT: control target
= control target key end

     0   :  { %v1979_v2 = vmov 0   ;;  %s2361_s0 = inlined_call_operand.vmem [shape: s32[64,1], index: 0, kind: input, shape index: {}]   ;;  %s2362_s1 = inlined_call_operand.vmem [shape: f32[64,32], index: 1, kind: input, shape index: {}]   ;;  %s2363_s2 = inlined_call_operand.vmem [shape: f32[32,128], index: 2, kind: input, shape index: {}]   ;;  %s2364_s3 = inlined_call_operand.vmem [shape: f32[32,128], index: 3, kind: input, shape index: {}]   ;;  %s2365_s4 = inlined_call_operand.vmem [shape: f32[1,128], index: 4, kind: input, shape index: {}]   ;;  %s2366_s5 = inlined_call_operand.vmem [shape: f32[1,32], index: 5, kind: input, shape index: {}]   ;;  %s2367_s6 = inlined_call_operand.vmem [shape: f32[32,32], index: 6, kind: input, shape index: {}]   ;;  %s2368_s7 = inlined_call_operand.vmem [shape: f32[1,32], index: 7, kind: input, shape index: {}]   ;;  %s2369_s8 = inlined_call_operand.vmem [shape: f32[32,2], index: 8, kind: input, shape index: {}]   ;;  %s2370_s9 = inlined_call_operand.vmem [shape: f32[1,2], index: 9, kind: input, shape index: {}]   ;;  %s2371_s10 = inlined_call_operand.hbm [shape: f32[2,2], index: 10, kind: output, shape index: {}]  }
   0x1   :  { %v38_v0 = vld [vmem:[%s2361_s0 + $0x10] sm:$0xff]  ;;  %v36_v1 = vld [vmem:[%s2361_s0] sm:$0xff]  ;;  %1872 = vset.pattern.permute.xlu1 %v1979_v2  ;;  %1871 = vset.pattern.permute.xlu0 %v1979_v2  ;;  %v39_v3 = vld [vmem:[%s2361_s0 + $0x18] sm:$0xff] }
   0x2   :  { %53 = vperm.xlu1 %1872, %v38_v0   ;;  %47 = vperm.xlu0 %1871, %v36_v1   ;;  %v37_v4 = vld [vmem:[%s2361_s0 + $0x8] sm:$0xff]  ;;  %v94_v5 = vld [vmem:[%s2362_s1] sm:$0xff]  ;;  %v96_v7 = vld [vmem:[%s2362_s1 + $0x10] sm:$0xff] }
   0x3   :  { %v95_v6 = vld [vmem:[%s2362_s1 + $0x8] sm:$0xff]  ;;  %v97_v8 = vld [vmem:[%s2362_s1 + $0x18] sm:$0xff] }
   0x4   :  { %v1780_v9 = vpack.c.bf16 %v95_v6, %v94_v5  ;;  %v1784_v10 = vpack.c.bf16 %v97_v8, %v96_v7 }
   0x5   :  { %15 = vsyncpa [#allocation3], 0  ;;  %v98_v11 = vld [vmem:[%s2362_s1 + $0x20] sm:$0xff]  ;;  %v99_v12 = vld [vmem:[%s2362_s1 + $0x28] sm:$0xff]  ;;  %v44_v27 = vlaneseq  ;;  %vm102_vm0 = vcmask 523264   ;;  %v1980_v31 = vmov 0.0  }
   0x6   :  { %56 = vperm.xlu1 %1872, %v39_v3   ;;  %50 = vperm.xlu0 %1871, %v37_v4   ;;  %v41_v13 = vld [vmem:[%s2361_s0 + $0x28] sm:$0xff]  ;;  %v40_v14 = vld [vmem:[%s2361_s0 + $0x20] sm:$0xff]  ;;  %v1788_v15 = vpack.c.bf16 %v99_v12, %v98_v11  ;;  %v100_v16 = vld [vmem:[%s2362_s1 + $0x30] sm:$0xff]  ;;  %v1981_v46 = vmov 0.0|0.0   ;;  %vm1982_vm9 = vmmov 0   ;;  %vm243_vm10 = vcmask 261120  }
   0x7   :  { %1781 = vmatprep.subr.bf16.mxu0 %v1780_v9  ;;  %v101_v17 = vld [vmem:[%s2362_s1 + $0x38] sm:$0xff]  ;;  %v42_v19 = vld [vmem:[%s2361_s0 + $0x30] sm:$0xff]  ;;  %v232_v21 = vld [vmem:[%s2363_s2] sm:$0xff]  ;;  %v45_v28 = vand.u32 127, %v44_v27  ;;  %s1984_s19 = smov 64   ;;  %s1985_s17 = smov [#allocation2]  }
   0x8   :  { %1783 = vmatpush3.bf16.msra.mxu0 %v1780_v9  ;;  %v43_v18 = vld [vmem:[%s2361_s0 + $0x38] sm:$0xff]  ;;  %v1792_v20 = vpack.c.bf16 %v101_v17, %v100_v16  ;;  %v233_v22 = vld [vmem:[%s2363_s2 + $0x8] sm:$0xff]  ;;  %v234_v23 = vld [vmem:[%s2363_s2 + $0x10] sm:$0xff]  ;;  %vm1483_vm11 = vcmask 9216  }
   0x9   :  { %1785 = vmatprep.subr.bf16.mxu0 %v1784_v10  ;;  %v1796_v24 = vpack.c.bf16 %v233_v22, %v232_v21  ;;  %v235_v25 = vld [vmem:[%s2363_s2 + $0x18] sm:$0xff]  ;;  %v373_v47 = vld [vmem:[%s2364_s3] sm:$0xff]  ;;  %v374_v48 = vld [vmem:[%s2364_s3 + $0x8] sm:$0xff] }
   0xa   :  { %62 = vperm.xlu1 %1872, %v41_v13   ;;  %59 = vperm.xlu0 %1871, %v40_v14   ;;  %v1800_v26 = vpack.c.bf16 %v235_v25, %v234_v23  ;;  %v2125_v49 = vpack.c.bf16 %v374_v48, %v373_v47  ;;  %v375_v50 = vld [vmem:[%s2364_s3 + $0x10] sm:$0xff]  ;;  %v376_v51 = vld [vmem:[%s2364_s3 + $0x18] sm:$0xff]  ;;  %v1515_v61 = vld [vmem:[%s2365_s4] ss:$0 sm:$0xff]  ;;  %s1983_s4 = smov 32   ;;  %s1491_s3 = sshll.u32 %s1985_s17, 4  ;;  %s1492_s3 = int_to_ptr.vmem [resolvable:$true] %s1491_s3 }
   0xb   :  { %1797 = vmatprep.subr.bf16.mxu1 %v1796_v24  ;;  %v2135_v52 = vpack.c.bf16 %v376_v51, %v375_v50  ;;  %p1960_p1 = scmp.lt.s32.totalorder %s1492_s3, %s1492_s3 }
   0xc   :  { %1787 = vmatpush3.bf16.msra.mxu0 %v1784_v10  ;;  %1799 = vmatpush3.bf16.msra.mxu1 %v1796_v24 }
   0xd   :  { %1789 = vmatprep.subr.bf16.mxu0 %v1788_v15  ;;  %1801 = vmatprep.subr.bf16.mxu1 %v1800_v26 }
   0xe   :  { %68 = vperm.xlu1 %1872, %v43_v18   ;;  %65 = vperm.xlu0 %1871, %v42_v19  }
  0x10   :  { %1791 = vmatpush3.bf16.msra.mxu0 %v1788_v15  ;;  %1803 = vmatpush3.bf16.msra.mxu1 %v1800_v26 }
  0x11   :  { %1793 = vmatprep.subr.bf16.mxu0 %v1792_v20  ;;  %1804 = vmatprep.subr.bf16.mxu1 %v1981_v46 }
  0x14   :  { %1795 = vmatpush3.bf16.msra.mxu0 %v1792_v20 }
  0x15   :  { %1810 = vmatprep.subr.bf16.mxu0 %v1981_v46 }
  0x81   :  { %v54_v29 = vpop.permute.xlu1 %53  ;;  %v48_v30 = vpop.permute.xlu0 %47 }
  0x82   :  { %vm70_vm1 = vcmp.eq.s32.totalorder %v45_v28, %v48_v30  ;;  %vm72_vm2 = vcmp.eq.s32.totalorder %v45_v28, %v54_v29 }
  0x83   :  { %v1499_v32 = vsel %vm70_vm1, 1.0, %v1980_v31  ;;  %v1501_v35 = vsel %vm72_vm2, 1.0, %v1980_v31 }
  0x84   :  { %1638 = vmatprep.mubr.msk.f32.mxu0 %vm102_vm0, %v1499_v32 }
  0x85   :  { %v57_v33 = vpop.permute.xlu1 %56  ;;  %v51_v34 = vpop.permute.xlu0 %50 }
  0x86   :  { %vm71_vm3 = vcmp.eq.s32.totalorder %v45_v28, %v51_v34  ;;  %vm73_vm4 = vcmp.eq.s32.totalorder %v45_v28, %v57_v33 }
  0x87   :  { %v1500_v36 = vsel %vm71_vm3, 1.0, %v1980_v31  ;;  %v1502_v39 = vsel %vm73_vm4, 1.0, %v1980_v31 }
  0x88   :  { %1639 = vmatmul.mubr.msk.f32.vlgmr.msra.gmra.mrb[0].mxu0 %vm102_vm0, %v1500_v36 }
  0x89   :  { %v63_v37 = vpop.permute.xlu1 %62  ;;  %1641 = vmatprep.mubr.msk.f32.mxu0 %vm102_vm0, %v1501_v35  ;;  %v60_v38 = vpop.permute.xlu0 %59  ;;  %1812 = vmatpush3.bf16.msra.mxu0 %v2125_v49 }
  0x8a   :  { %vm74_vm5 = vcmp.eq.s32.totalorder %v45_v28, %v60_v38  ;;  %vm75_vm6 = vcmp.eq.s32.totalorder %v45_v28, %v63_v37  ;;  %1813 = vmatprep.subr.bf16.mxu0 %v1981_v46 }
  0x8b   :  { %v1503_v40 = vsel %vm74_vm5, 1.0, %v1980_v31  ;;  %v1504_v43 = vsel %vm75_vm6, 1.0, %v1980_v31 }
  0x8c   :  { %1642 = vmatmul.mubr.msk.f32.gmra.mrb[2].mxu0 %vm102_vm0, %v1502_v39 }
  0x8d   :  { %v69_v41 = vpop.permute.xlu1 %68  ;;  %1644 = vmatprep.mubr.msk.f32.mxu0 %vm102_vm0, %v1503_v40  ;;  %v66_v42 = vpop.permute.xlu0 %65  ;;  %1815 = vmatpush3.bf16.msra.mxu0 %v2135_v52 }
  0x8e   :  { %vm76_vm7 = vcmp.eq.s32.totalorder %v45_v28, %v66_v42  ;;  %vm77_vm8 = vcmp.eq.s32.totalorder %v45_v28, %v69_v41  ;;  %1822 = vmatprep.subr.bf16.mxu0 %v1981_v46 }
  0x8f   :  { %v1505_v44 = vsel %vm76_vm7, 1.0, %v1980_v31  ;;  %v1506_v45 = vsel %vm77_vm8, 1.0, %v1980_v31 }
  0x90   :  { %1645 = vmatmul.mubr.msk.f32.gmra.mrb[4].mxu0 %vm102_vm0, %v1504_v43 }
  0x91   :  { %1647 = vmatprep.mubr.msk.f32.mxu0 %vm102_vm0, %v1505_v44 }
  0x94   :  { %1648 = vmatmul.mubr.msk.f32.gmra.mrb[6].mxu0 %vm102_vm0, %v1506_v45 }
  0x95   :  { %1689 = vmatprep.mubr.msk.f32.mxu0 %vm1982_vm9, %v1980_v31 }
 0x15b   :  { %v1640_v53 = vpop.f32.mrb[0].mxu0 }
 0x15c   :  { %v193_v54 = vpop.f32.mrb[1].mxu0 }
 0x15d   :  { %1658 = vmatprep.mubr.msk.f32.mxu1 %vm243_vm10, %v193_v54 }
 0x15e   :  { %1659 = vmatmul.mubr.msk.f32.vlgmr.msra.gmra.mrb[0].mxu1 %vm243_vm10, %v1640_v53 }
 0x15f   :  { %1806 = vmatpush3.bf16.msra.mxu1 %v2125_v49  ;;  %v1643_v55 = vpop.f32.mrb[2].mxu0 }
 0x160   :  { %v203_v56 = vpop.f32.mrb[3].mxu0  ;;  %1807 = vmatprep.subr.bf16.mxu1 %v1981_v46 }
 0x161   :  { %1661 = vmatprep.mubr.msk.f32.mxu1 %vm243_vm10, %v203_v56 }
 0x162   :  { %1662 = vmatmul.mubr.msk.f32.gmra.mrb[2].mxu1 %vm243_vm10, %v1643_v55 }
 0x163   :  { %v1646_v57 = vpop.f32.mrb[4].mxu0  ;;  %1809 = vmatpush3.bf16.msra.mxu1 %v2135_v52 }
 0x164   :  { %v213_v58 = vpop.f32.mrb[5].mxu0  ;;  %1816 = vmatprep.subr.bf16.mxu1 %v1981_v46 }
 0x165   :  { %1664 = vmatprep.mubr.msk.f32.mxu1 %vm243_vm10, %v213_v58 }
 0x166   :  { %1665 = vmatmul.mubr.msk.f32.gmra.mrb[4].mxu1 %vm243_vm10, %v1646_v57 }
 0x167   :  { %v1649_v59 = vpop.f32.mrb[6].mxu0 }
 0x168   :  { %v223_v60 = vpop.f32.mrb[7].mxu0 }
 0x169   :  { %1667 = vmatprep.mubr.msk.f32.mxu1 %vm243_vm10, %v223_v60 }
 0x16a   :  { %1668 = vmatmul.mubr.msk.f32.gmra.mrb[6].mxu1 %vm243_vm10, %v1649_v59 }
 0x16b   :  { %1678 = vmatprep.mubr.msk.f32.mxu1 %vm1982_vm9, %v1980_v31 }
 0x16e   :  { %1679 = vmatmul.mubr.f32.vlgmr.msra.gmra.mrb[8].mxu1 %v1980_v31 }
 0x16f   :  { %1818 = vmatpush3.bf16.msra.mxu1 %v2125_v49  ;;  %1700 = vmatprep.mubr.msk.f32.mxu1 %vm1982_vm9, %v1980_v31 }
 0x170   :  { %1819 = vmatprep.subr.bf16.mxu1 %v1981_v46 }
 0x173   :  { %1821 = vmatpush3.bf16.msra.mxu1 %v2135_v52 }
 0x174   :  { %1828 = vmatprep.subr.bf16.mxu1 %v1981_v46 }
 0x231   :  { %v1660_v62 = vpop.f32.mrb[0].mxu1 }
 0x232   :  { %v340_v63 = vadd.f32 %v1660_v62, %v1515_v61  ;;  %v334_v0 = vpop.f32.mrb[1].mxu1 }
 0x233   :  { %v335_v13 = vadd.f32 %v1515_v61, %v334_v0 }
 0x235   :  { %v1663_v1 = vpop.f32.mrb[2].mxu1 }
 0x236   :  { %v2165_v2 = vadd.f32 %v1663_v1, %v1515_v61  ;;  %v344_v3 = vpop.f32.mrb[3].mxu1 }
 0x237   :  { %v2167_v4 = vadd.f32 %v1515_v61, %v344_v3 }
 0x239   :  { %v1666_v5 = vpop.f32.mrb[4].mxu1 }
 0x23a   :  { %v2169_v6 = vadd.f32 %v1666_v5, %v1515_v61  ;;  %v354_v7 = vpop.f32.mrb[5].mxu1 }
 0x23b   :  { %v2171_v8 = vadd.f32 %v1515_v61, %v354_v7 }
 0x23d   :  { %v1669_v9 = vpop.f32.mrb[6].mxu1 }
 0x23e   :  { %v2173_v10 = vadd.f32 %v1669_v9, %v1515_v61  ;;  %v364_v11 = vpop.f32.mrb[7].mxu1 }
 0x23f   :  { %v2175_v12 = vadd.f32 %v1515_v61, %v364_v11 }
 0x241   :  { %v446_v14 = vpop.f32.mrb[8].mxu1 }
 0x242   :  { %v450_v15 = vadd.f32 %v446_v14, %v335_v13  ;;  %v1680_v16 = vpop.f32.mrb[9].mxu1 }
 0x244   :  { %1873 = vtanh.f32 %v450_v15  ;;  %v1524_v18 = vmul.f32 -1.442695, %v450_v15 }
 0x246   :  { %1875 = vpow2.f32 %v1524_v18 }
 0x24e   :  { %v1874_v17 = vpop.eup %1873 }
 0x24f   :  { %460 = vrot.lane.b32.xlu0 %v1874_v17, %s1983_s4 }
 0x250   :  { %v1876_v19 = vpop.eup %1875 }
 0x251   :  { %v454_v20 = vadd.f32 1.0, %v1876_v19 }
 0x253   :  { %1877 = vrcp.f32 %v454_v20 }
 0x25d   :  { %v1878_v21 = vpop.eup %1877 }
 0x25e   :  { %v458_v24 = vmul.f32 0.0, %v1878_v21 }
 0x2c1   :  { %v461_v22 = vpop.permute.xlu0 %460 }
 0x2c2   :  { %v463_v23 = vmul.f32 %v1878_v21, %v461_v22 }
 0x2c4   :  { %465 = vrot.lane.b32.xlu1 %v463_v23, %s1983_s4 }
 0x336   :  { %v466_v25 = vpop.permute.xlu1 %465 }
 0x337   :  { %v468_v26 = vadd.f32 %v466_v25, %v458_v24 }
 0x339   :  { %1879 = vtanh.f32 %v468_v26 }
 0x343   :  { %v1880_v27 = vpop.eup %1879 }
 0x344   :  { %471 = vrot.lane.b32.xlu0 %v1880_v27, %s1983_s4 }
 0x3b6   :  { %v472_v28 = vpop.permute.xlu0 %471 }
 0x3b7   :  { %v2180_v29 = vmul.f32 %v1878_v21, %v472_v28 }
 0x3b9   :  { %476 = vrot.lane.b32.xlu1 %v2180_v29, %s1984_s19 }
 0x42b   :  { %v477_v30 = vpop.permute.xlu1 %476 }
 0x42c   :  { %1690 = vmatmul.mubr.msk.f32.vlgmr.msra.gmra.mrb[8].mxu0 %vm243_vm10, %v477_v30 }
 0x42d   :  { %1824 = vmatpush3.bf16.msra.mxu0 %v2125_v49  ;;  %1711 = vmatprep.mubr.msk.f32.mxu0 %vm1982_vm9, %v1980_v31 }
 0x42e   :  { %1825 = vmatprep.subr.bf16.mxu0 %v1981_v46 }
 0x431   :  { %1827 = vmatpush3.bf16.msra.mxu0 %v2135_v52 }
 0x432   :  { %1834 = vmatprep.subr.bf16.mxu0 %v1981_v46 }
 0x4ff   :  { %v546_v32 = vpop.f32.mrb[8].mxu0 }
 0x500   :  { %v550_v33 = vadd.f32 %v546_v32, %v340_v63  ;;  %v1691_v34 = vpop.f32.mrb[9].mxu0 }
 0x502   :  { %1881 = vtanh.f32 %v550_v33  ;;  %v1526_v36 = vmul.f32 -1.442695, %v550_v33 }
 0x504   :  { %1883 = vpow2.f32 %v1526_v36 }
 0x50c   :  { %v1882_v35 = vpop.eup %1881 }
 0x50d   :  { %560 = vrot.lane.b32.xlu0 %v1882_v35, %s1983_s4 }
 0x50e   :  { %v1884_v37 = vpop.eup %1883 }
 0x50f   :  { %v554_v38 = vadd.f32 1.0, %v1884_v37 }
 0x511   :  { %1885 = vrcp.f32 %v554_v38 }
 0x51b   :  { %v1886_v39 = vpop.eup %1885 }
 0x51c   :  { %v558_v42 = vmul.f32 %v1886_v39, %v468_v26 }
 0x57f   :  { %v561_v40 = vpop.permute.xlu0 %560 }
 0x580   :  { %v563_v41 = vmul.f32 %v1886_v39, %v561_v40 }
 0x582   :  { %565 = vrot.lane.b32.xlu1 %v563_v41, %s1983_s4 }
 0x5f4   :  { %v566_v43 = vpop.permute.xlu1 %565 }
 0x5f5   :  { %v568_v44 = vadd.f32 %v566_v43, %v558_v42 }
 0x5f7   :  { %1887 = vtanh.f32 %v568_v44 }
 0x601   :  { %v1888_v45 = vpop.eup %1887 }
 0x602   :  { %571 = vrot.lane.b32.xlu0 %v1888_v45, %s1983_s4 }
 0x674   :  { %v572_v47 = vpop.permute.xlu0 %571 }
 0x675   :  { %v2194_v48 = vmul.f32 %v1886_v39, %v572_v47 }
 0x677   :  { %576 = vrot.lane.b32.xlu1 %v2194_v48, %s1984_s19 }
 0x6e9   :  { %v577_v50 = vpop.permute.xlu1 %576 }
 0x6ea   :  { %1701 = vmatmul.mubr.msk.f32.vlgmr.msra.gmra.mrb[10].mxu1 %vm243_vm10, %v577_v50 }
 0x6eb   :  { %1830 = vmatpush3.bf16.msra.mxu1 %v2125_v49  ;;  %1722 = vmatprep.mubr.msk.f32.mxu1 %vm1982_vm9, %v1980_v31 }
 0x6ec   :  { %1831 = vmatprep.subr.bf16.mxu1 %v1981_v46 }
 0x6ef   :  { %1833 = vmatpush3.bf16.msra.mxu1 %v2135_v52 }
 0x6f0   :  { %1840 = vmatprep.subr.bf16.mxu1 %v1981_v46 }
 0x7bd   :  { %v646_v51 = vpop.f32.mrb[10].mxu1 }
 0x7be   :  { %v650_v53 = vadd.f32 %v646_v51, %v2167_v4  ;;  %v1702_v54 = vpop.f32.mrb[11].mxu1 }
 0x7c0   :  { %1889 = vtanh.f32 %v650_v53  ;;  %v1528_v56 = vmul.f32 -1.442695, %v650_v53 }
 0x7c2   :  { %1891 = vpow2.f32 %v1528_v56 }
 0x7ca   :  { %v1890_v55 = vpop.eup %1889 }
 0x7cb   :  { %660 = vrot.lane.b32.xlu0 %v1890_v55, %s1983_s4 }
 0x7cc   :  { %v1892_v57 = vpop.eup %1891 }
 0x7cd   :  { %v654_v58 = vadd.f32 1.0, %v1892_v57 }
 0x7cf   :  { %1893 = vrcp.f32 %v654_v58 }
 0x7d9   :  { %v1894_v59 = vpop.eup %1893 }
 0x7da   :  { %v658_v62 = vmul.f32 %v1894_v59, %v568_v44 }
 0x83d   :  { %v661_v60 = vpop.permute.xlu0 %660 }
 0x83e   :  { %v663_v61 = vmul.f32 %v1894_v59, %v661_v60 }
 0x840   :  { %665 = vrot.lane.b32.xlu1 %v663_v61, %s1983_s4 }
 0x8b2   :  { %v666_v63 = vpop.permute.xlu1 %665 }
 0x8b3   :  { %v668_v0 = vadd.f32 %v666_v63, %v658_v62 }
 0x8b5   :  { %1895 = vtanh.f32 %v668_v0 }
 0x8bf   :  { %v1896_v1 = vpop.eup %1895 }
 0x8c0   :  { %671 = vrot.lane.b32.xlu0 %v1896_v1, %s1983_s4 }
 0x932   :  { %v672_v3 = vpop.permute.xlu0 %671 }
 0x933   :  { %v2209_v4 = vmul.f32 %v1894_v59, %v672_v3 }
 0x935   :  { %676 = vrot.lane.b32.xlu1 %v2209_v4, %s1984_s19 }
 0x9a7   :  { %v677_v5 = vpop.permute.xlu1 %676 }
 0x9a8   :  { %1712 = vmatmul.mubr.msk.f32.vlgmr.msra.gmra.mrb[10].mxu0 %vm243_vm10, %v677_v5 }
 0x9a9   :  { %1836 = vmatpush3.bf16.msra.mxu0 %v2125_v49  ;;  %1733 = vmatprep.mubr.msk.f32.mxu0 %vm1982_vm9, %v1980_v31 }
 0x9aa   :  { %1837 = vmatprep.subr.bf16.mxu0 %v1981_v46 }
 0x9ad   :  { %1839 = vmatpush3.bf16.msra.mxu0 %v2135_v52 }
 0x9ae   :  { %1846 = vmatprep.subr.bf16.mxu0 %v1981_v46 }
 0xa7b   :  { %v746_v7 = vpop.f32.mrb[10].mxu0 }
 0xa7c   :  { %v750_v9 = vadd.f32 %v746_v7, %v2165_v2  ;;  %v1713_v11 = vpop.f32.mrb[11].mxu0 }
 0xa7e   :  { %1897 = vtanh.f32 %v750_v9  ;;  %v1530_v14 = vmul.f32 -1.442695, %v750_v9 }
 0xa80   :  { %1899 = vpow2.f32 %v1530_v14 }
 0xa88   :  { %v1898_v13 = vpop.eup %1897 }
 0xa89   :  { %760 = vrot.lane.b32.xlu0 %v1898_v13, %s1983_s4 }
 0xa8a   :  { %v1900_v15 = vpop.eup %1899 }
 0xa8b   :  { %v754_v16 = vadd.f32 1.0, %v1900_v15 }
 0xa8d   :  { %1901 = vrcp.f32 %v754_v16 }
 0xa97   :  { %v1902_v17 = vpop.eup %1901 }
 0xa98   :  { %v758_v20 = vmul.f32 %v1902_v17, %v668_v0 }
 0xafb   :  { %v761_v18 = vpop.permute.xlu0 %760 }
 0xafc   :  { %v763_v19 = vmul.f32 %v1902_v17, %v761_v18 }
 0xafe   :  { %765 = vrot.lane.b32.xlu1 %v763_v19, %s1983_s4 }
 0xb70   :  { %v766_v21 = vpop.permute.xlu1 %765 }
 0xb71   :  { %v768_v22 = vadd.f32 %v766_v21, %v758_v20 }
 0xb73   :  { %1903 = vtanh.f32 %v768_v22 }
 0xb7d   :  { %v1904_v2 = vpop.eup %1903 }
 0xb7e   :  { %771 = vrot.lane.b32.xlu0 %v1904_v2, %s1983_s4 }
 0xbf0   :  { %v772_v23 = vpop.permute.xlu0 %771 }
 0xbf1   :  { %v2224_v24 = vmul.f32 %v1902_v17, %v772_v23  ;;  %v1539_v23 = vld [vmem:[%s2366_s5] ss:$0 sm:$0xff] }
 0xbf3   :  { %776 = vrot.lane.b32.xlu1 %v2224_v24, %s1984_s19 }
 0xc65   :  { %v777_v25 = vpop.permute.xlu1 %776 }
 0xc66   :  { %1723 = vmatmul.mubr.msk.f32.vlgmr.msra.gmra.mrb[12].mxu1 %vm243_vm10, %v777_v25 }
 0xc67   :  { %1842 = vmatpush3.bf16.msra.mxu1 %v2125_v49  ;;  %1744 = vmatprep.mubr.msk.f32.mxu1 %vm1982_vm9, %v1980_v31 }
 0xc68   :  { %1843 = vmatprep.subr.bf16.mxu1 %v1981_v46 }
 0xc6b   :  { %1845 = vmatpush3.bf16.msra.mxu1 %v2135_v52 }
 0xc6c   :  { %1852 = vmatprep.subr.bf16.mxu1 %v1981_v46 }
 0xd39   :  { %v846_v26 = vpop.f32.mrb[12].mxu1 }
 0xd3a   :  { %v850_v27 = vadd.f32 %v846_v26, %v2171_v8  ;;  %v1724_v28 = vpop.f32.mrb[13].mxu1 }
 0xd3c   :  { %1905 = vtanh.f32 %v850_v27  ;;  %v1532_v32 = vmul.f32 -1.442695, %v850_v27 }
 0xd3e   :  { %1907 = vpow2.f32 %v1532_v32 }
 0xd46   :  { %v1906_v30 = vpop.eup %1905 }
 0xd47   :  { %860 = vrot.lane.b32.xlu0 %v1906_v30, %s1983_s4 }
 0xd48   :  { %v1908_v33 = vpop.eup %1907 }
 0xd49   :  { %v854_v34 = vadd.f32 1.0, %v1908_v33 }
 0xd4b   :  { %1909 = vrcp.f32 %v854_v34 }
 0xd55   :  { %v1910_v35 = vpop.eup %1909 }
 0xd56   :  { %v858_v38 = vmul.f32 %v1910_v35, %v768_v22 }
 0xdb9   :  { %v861_v36 = vpop.permute.xlu0 %860 }
 0xdba   :  { %v863_v37 = vmul.f32 %v1910_v35, %v861_v36 }
 0xdbc   :  { %865 = vrot.lane.b32.xlu1 %v863_v37, %s1983_s4 }
 0xe2e   :  { %v866_v39 = vpop.permute.xlu1 %865 }
 0xe2f   :  { %v868_v40 = vadd.f32 %v866_v39, %v858_v38 }
 0xe31   :  { %1911 = vtanh.f32 %v868_v40 }
 0xe3b   :  { %v1912_v8 = vpop.eup %1911 }
 0xe3c   :  { %871 = vrot.lane.b32.xlu0 %v1912_v8, %s1983_s4 }
 0xeae   :  { %v872_v41 = vpop.permute.xlu0 %871 }
 0xeaf   :  { %v2239_v42 = vmul.f32 %v1910_v35, %v872_v41 }
 0xeb1   :  { %876 = vrot.lane.b32.xlu1 %v2239_v42, %s1984_s19 }
 0xf23   :  { %v877_v43 = vpop.permute.xlu1 %876 }
 0xf24   :  { %1734 = vmatmul.mubr.msk.f32.vlgmr.msra.gmra.mrb[12].mxu0 %vm243_vm10, %v877_v43 }
 0xf25   :  { %1848 = vmatpush3.bf16.msra.mxu0 %v2125_v49  ;;  %1755 = vmatprep.mubr.msk.f32.mxu0 %vm1982_vm9, %v1980_v31 }
 0xf26   :  { %1849 = vmatprep.subr.bf16.mxu0 %v1981_v46 }
 0xf29   :  { %1851 = vmatpush3.bf16.msra.mxu0 %v2135_v52 }
 0xf2a   :  { %1858 = vmatprep.subr.bf16.mxu0 %v1981_v46 }
 0xff7   :  { %v946_v44 = vpop.f32.mrb[12].mxu0 }
 0xff8   :  { %v950_v45 = vadd.f32 %v946_v44, %v2169_v6  ;;  %v1735_v47 = vpop.f32.mrb[13].mxu0 }
 0xffa   :  { %1913 = vtanh.f32 %v950_v45  ;;  %v1534_v51 = vmul.f32 -1.442695, %v950_v45 }
 0xffc   :  { %1915 = vpow2.f32 %v1534_v51 }
0x1004   :  { %v1914_v50 = vpop.eup %1913 }
0x1005   :  { %960 = vrot.lane.b32.xlu0 %v1914_v50, %s1983_s4 }
0x1006   :  { %v1916_v49 = vpop.eup %1915 }
0x1007   :  { %v954_v53 = vadd.f32 1.0, %v1916_v49 }
0x1009   :  { %1917 = vrcp.f32 %v954_v53 }
0x1013   :  { %v1918_v54 = vpop.eup %1917 }
0x1014   :  { %v958_v52 = vmul.f32 %v1918_v54, %v868_v40 }
0x1077   :  { %v961_v55 = vpop.permute.xlu0 %960 }
0x1078   :  { %v963_v56 = vmul.f32 %v1918_v54, %v961_v55 }
0x107a   :  { %965 = vrot.lane.b32.xlu1 %v963_v56, %s1983_s4 }
0x10ec   :  { %v966_v57 = vpop.permute.xlu1 %965 }
0x10ed   :  { %v968_v58 = vadd.f32 %v966_v57, %v958_v52 }
0x10ef   :  { %1919 = vtanh.f32 %v968_v58 }
0x10f9   :  { %v1920_v6 = vpop.eup %1919 }
0x10fa   :  { %971 = vrot.lane.b32.xlu0 %v1920_v6, %s1983_s4 }
0x116c   :  { %v972_v59 = vpop.permute.xlu0 %971 }
0x116d   :  { %v2254_v60 = vmul.f32 %v1918_v54, %v972_v59 }
0x116f   :  { %976 = vrot.lane.b32.xlu1 %v2254_v60, %s1984_s19 }
0x11e1   :  { %v977_v61 = vpop.permute.xlu1 %976 }
0x11e2   :  { %1745 = vmatmul.mubr.msk.f32.vlgmr.msra.gmra.mrb[14].mxu1 %vm243_vm10, %v977_v61 }
0x11e3   :  { %1766 = vmatprep.mubr.msk.f32.mxu1 %vm1982_vm9, %v1980_v31 }
0x12b5   :  { %v1046_v62 = vpop.f32.mrb[14].mxu1 }
0x12b6   :  { %v1050_v63 = vadd.f32 %v1046_v62, %v2175_v12  ;;  %v1746_v0 = vpop.f32.mrb[15].mxu1 }
0x12b7   :  { %v1312_v0 = vld [vmem:[%s2367_s6] sm:$0xff] }
0x12b8   :  { %1921 = vtanh.f32 %v1050_v63  ;;  %v1536_v3 = vmul.f32 -1.442695, %v1050_v63 }
0x12ba   :  { %1923 = vpow2.f32 %v1536_v3  ;;  %v1314_v3 = vld [vmem:[%s2367_s6 + $0x10] sm:$0xff] }
0x12c2   :  { %v1922_v1 = vpop.eup %1921 }
0x12c3   :  { %1060 = vrot.lane.b32.xlu0 %v1922_v1, %s1983_s4  ;;  %v1313_v1 = vld [vmem:[%s2367_s6 + $0x8] sm:$0xff] }
0x12c4   :  { %v1924_v5 = vpop.eup %1923 }
0x12c5   :  { %v1054_v7 = vadd.f32 1.0, %v1924_v5  ;;  %v1853_v5 = vpack.c.bf16 %v1313_v1, %v1312_v0 }
0x12c7   :  { %1925 = vrcp.f32 %v1054_v7  ;;  %v1315_v7 = vld [vmem:[%s2367_s6 + $0x18] sm:$0xff]  ;;  %1854 = vmatpush3.bf16.msra.mxu1 %v1853_v5 }
0x12c8   :  { %1855 = vmatprep.subr.bf16.mxu1 %v1981_v46 }
0x12d1   :  { %v1926_v9 = vpop.eup %1925 }
0x12d2   :  { %v1058_v14 = vmul.f32 %v1926_v9, %v968_v58 }
0x1335   :  { %v1061_v11 = vpop.permute.xlu0 %1060 }
0x1336   :  { %v1063_v13 = vmul.f32 %v1926_v9, %v1061_v11 }
0x1338   :  { %1065 = vrot.lane.b32.xlu1 %v1063_v13, %s1983_s4 }
0x13aa   :  { %v1066_v15 = vpop.permute.xlu1 %1065 }
0x13ab   :  { %v1068_v16 = vadd.f32 %v1066_v15, %v1058_v14 }
0x13ad   :  { %1927 = vtanh.f32 %v1068_v16 }
0x13b7   :  { %v1928_v12 = vpop.eup %1927 }
0x13b8   :  { %1071 = vrot.lane.b32.xlu0 %v1928_v12, %s1983_s4 }
0x142a   :  { %v1072_v17 = vpop.permute.xlu0 %1071 }
0x142b   :  { %v2265_v18 = vmul.f32 %v1926_v9, %v1072_v17  ;;  %v1856_v9 = vpack.c.bf16 %v1315_v7, %v1314_v3 }
0x142d   :  { %1076 = vrot.lane.b32.xlu1 %v2265_v18, %s1984_s19  ;;  %1857 = vmatpush3.bf16.msra.mxu1 %v1856_v9 }
0x149f   :  { %v1077_v19 = vpop.permute.xlu1 %1076 }
0x14a0   :  { %1756 = vmatmul.mubr.msk.f32.vlgmr.msra.gmra.mrb[14].mxu0 %vm243_vm10, %v1077_v19 }
0x14a1   :  { %1777 = vmatprep.mubr.msk.f32.mxu0 %vm1982_vm9, %v1980_v31 }
0x1573   :  { %v1146_v20 = vpop.f32.mrb[14].mxu0 }
0x1574   :  { %v1150_v21 = vadd.f32 %v1146_v20, %v2173_v10  ;;  %v1757_v22 = vpop.f32.mrb[15].mxu0 }
0x1576   :  { %1929 = vtanh.f32 %v1150_v21  ;;  %v1538_v25 = vmul.f32 -1.442695, %v1150_v21 }
0x1578   :  { %1931 = vpow2.f32 %v1538_v25 }
0x1580   :  { %v1930_v2 = vpop.eup %1929 }
0x1581   :  { %1160 = vrot.lane.b32.xlu0 %v1930_v2, %s1983_s4 }
0x1582   :  { %v1932_v26 = vpop.eup %1931 }
0x1583   :  { %v1154_v27 = vadd.f32 1.0, %v1932_v26 }
0x1585   :  { %1181 = vrot.lane.b32.xlu0 %v1539_v23, %s1984_s19  ;;  %1933 = vrcp.f32 %v1154_v27 }
0x158f   :  { %v1934_v31 = vpop.eup %1933 }
0x1590   :  { %v1158_v36 = vmul.f32 %v1934_v31, %v1068_v16 }
0x15f3   :  { %v1161_v28 = vpop.permute.xlu0 %1160 }
0x15f4   :  { %v1163_v30 = vmul.f32 %v1934_v31, %v1161_v28 }
0x15f6   :  { %1165 = vrot.lane.b32.xlu1 %v1163_v30, %s1983_s4 }
0x15f7   :  { %v1182_v10 = vpop.permute.xlu0 %1181 }
0x15f8   :  { %v1184_v32 = vmul.f32 %v1182_v10, %v2180_v29  ;;  %v1200_v33 = vmul.f32 %v1182_v10, %v2209_v4  ;;  %v1216_v34 = vmul.f32 %v1182_v10, %v2239_v42  ;;  %v1232_v35 = vmul.f32 %v1182_v10, %v2265_v18 }
0x15f9   :  { %v1192_v44 = vmul.f32 %v1182_v10, %v2194_v48  ;;  %v1208_v45 = vmul.f32 %v1182_v10, %v2224_v24  ;;  %v1224_v47 = vmul.f32 %v1182_v10, %v2254_v60 }
0x15fa   :  { %1186 = vrot.lane.b32.xlu0 %v1184_v32, %s1984_s19 }
0x15fe   :  { %1202 = vrot.lane.b32.xlu0 %v1200_v33, %s1984_s19 }
0x1602   :  { %1218 = vrot.lane.b32.xlu0 %v1216_v34, %s1984_s19 }
0x1606   :  { %1234 = vrot.lane.b32.xlu0 %v1232_v35, %s1984_s19 }
0x1668   :  { %v1166_v37 = vpop.permute.xlu1 %1165 }
0x1669   :  { %v1168_v38 = vadd.f32 %v1166_v37, %v1158_v36 }
0x166b   :  { %1935 = vtanh.f32 %v1168_v38 }
0x166c   :  { %v1187_v39 = vpop.permute.xlu0 %1186 }
0x166d   :  { %v1189_v40 = vsel %vm243_vm10, %v1187_v39, 0.0 }
0x166e   :  { %1190 = vadd.xlane.f32.xlu0 %v1189_v40 }
0x1670   :  { %v1203_v8 = vpop.permute.xlu0 %1202 }
0x1671   :  { %v1205_v41 = vsel %vm243_vm10, %v1203_v8, 0.0 }
0x1672   :  { %1206 = vadd.xlane.f32.xlu0 %v1205_v41 }
0x1674   :  { %v1219_v57 = vpop.permute.xlu0 %1218 }
0x1675   :  { %v1936_v43 = vpop.eup %1935  ;;  %v1221_v6 = vsel %vm243_vm10, %v1219_v57, 0.0 }
0x1676   :  { %1171 = vrot.lane.b32.xlu1 %v1936_v43, %s1983_s4 }
0x1678   :  { %v1235_v59 = vpop.permute.xlu0 %1234 }
0x1679   :  { %v1237_v61 = vsel %vm243_vm10, %v1235_v59, 0.0 }
0x167a   :  { %1194 = vrot.lane.b32.xlu1 %v1192_v44, %s1984_s19 }
0x167e   :  { %1210 = vrot.lane.b32.xlu1 %v1208_v45, %s1984_s19 }
0x1682   :  { %1226 = vrot.lane.b32.xlu1 %v1224_v47, %s1984_s19 }
0x16e8   :  { %v1172_v50 = vpop.permute.xlu1 %1171 }
0x16e9   :  { %v2296_v51 = vmul.f32 %v1934_v31, %v1172_v50 }
0x16eb   :  { %v1240_v49 = vmul.f32 %v1182_v10, %v2296_v51 }
0x16ec   :  { %v1195_v53 = vpop.permute.xlu1 %1194 }
0x16ed   :  { %1242 = vrot.lane.b32.xlu1 %v1240_v49, %s1984_s19  ;;  %v1197_v58 = vsel %vm243_vm10, %v1195_v53, 0.0 }
0x16f0   :  { %v1211_v54 = vpop.permute.xlu1 %1210 }
0x16f1   :  { %v1213_v55 = vsel %vm243_vm10, %v1211_v54, 0.0 }
0x16f2   :  { %1214 = vadd.xlane.f32.xlu0 %v1213_v55 }
0x16f4   :  { %v1227_v56 = vpop.permute.xlu1 %1226 }
0x16f5   :  { %v1229_v52 = vsel %vm243_vm10, %v1227_v56, 0.0 }
0x16f6   :  { %1230 = vadd.xlane.f32.xlu0 %v1229_v52 }
0x16fb   :  { %v1191_v11 = vpop.xlane.xlu0 %1190 }
0x16ff   :  { %v1207_v15 = vpop.xlane.xlu0 %1206 }
0x1711   :  { %1198 = vadd.xlane.f32.xlu1 %v1197_v58 }
0x1715   :  { %1222 = vadd.xlane.f32.xlu1 %v1221_v6 }
0x1719   :  { %1238 = vadd.xlane.f32.xlu1 %v1237_v61 }
0x175f   :  { %v1243_v62 = vpop.permute.xlu1 %1242 }
0x1760   :  { %v1245_v63 = vsel %vm243_vm10, %v1243_v62, 0.0 }
0x1761   :  { %1246 = vadd.xlane.f32.xlu0 %v1245_v63 }
0x177f   :  { %v1215_v12 = vpop.xlane.xlu0 %1214 }
0x1783   :  { %v1231_v21 = vpop.xlane.xlu0 %1230 }
0x179e   :  { %v1199_v13 = vpop.xlane.xlu1 %1198 }
0x179f   :  { %v1248_v14 = vmax.f32 %v1191_v11, %v1199_v13 }
0x17a1   :  { %v1249_v16 = vmax.f32 %v1248_v14, %v1207_v15  ;;  %v1400_v14 = vld [vmem:[%s2369_s8 + $0x8] sm:$0xff] }
0x17a2   :  { %v1223_v19 = vpop.xlane.xlu1 %1222 }
0x17a3   :  { %v1250_v17 = vmax.f32 %v1249_v16, %v1215_v12 }
0x17a5   :  { %v1251_v20 = vmax.f32 %v1250_v17, %v1223_v19 }
0x17a6   :  { %v1239_v2 = vpop.xlane.xlu1 %1238 }
0x17a7   :  { %v1252_v22 = vmax.f32 %v1251_v20, %v1231_v21 }
0x17a9   :  { %v1253_v23 = vmax.f32 %v1252_v22, %v1239_v2 }
0x17ee   :  { %v1247_v25 = vpop.xlane.xlu0 %1246 }
0x17ef   :  { %v1254_v26 = vmax.f32 %v1253_v23, %v1247_v25 }
0x17f1   :  { %v1255_v27 = vsub.f32 %v1191_v11, %v1254_v26  ;;  %v1258_v31 = vsub.f32 %v1199_v13, %v1254_v26  ;;  %v1261_v28 = vsub.f32 %v1207_v15, %v1254_v26  ;;  %v1264_v30 = vsub.f32 %v1215_v12, %v1254_v26  ;;  %v1399_v13 = vld [vmem:[%s2369_s8] sm:$0xff] }
0x17f2   :  { %v1267_v34 = vsub.f32 %v1223_v19, %v1254_v26  ;;  %v1270_v36 = vsub.f32 %v1231_v21, %v1254_v26  ;;  %v1273_v38 = vsub.f32 %v1239_v2, %v1254_v26  ;;  %v1276_v40 = vsub.f32 %v1247_v25, %v1254_v26 }
0x17f3   :  { %v1256_v10 = vmul.f32 1.442695, %v1255_v27  ;;  %v1259_v32 = vmul.f32 1.442695, %v1258_v31  ;;  %v1262_v33 = vmul.f32 1.442695, %v1261_v28 }
0x17f4   :  { %v1265_v35 = vmul.f32 1.442695, %v1264_v30  ;;  %v1268_v37 = vmul.f32 1.442695, %v1267_v34  ;;  %v1271_v39 = vmul.f32 1.442695, %v1270_v36 }
0x17f5   :  { %1937 = vpow2.f32 %v1256_v10  ;;  %v1274_v8 = vmul.f32 1.442695, %v1273_v38  ;;  %v1277_v41 = vmul.f32 1.442695, %v1276_v40  ;;  %v1542_v30 = vld [vmem:[%s2370_s9] ss:$0 sm:$0xff] }
0x17f6   :  { %1939 = vpow2.f32 %v1259_v32 }
0x17f7   :  { %1941 = vpow2.f32 %v1262_v33 }
0x17f8   :  { %1943 = vpow2.f32 %v1265_v35 }
0x17f9   :  { %1945 = vpow2.f32 %v1268_v37 }
0x17fa   :  { %1947 = vpow2.f32 %v1271_v39 }
0x17fb   :  { %1949 = vpow2.f32 %v1274_v8 }
0x17fc   :  { %1951 = vpow2.f32 %v1277_v41 }
0x17ff   :  { %v1938_v43 = vpop.eup %1937 }
0x1800   :  { %v1940_v44 = vpop.eup %1939 }
0x1801   :  { %v1279_v45 = vadd.f32 %v1940_v44, %v1938_v43  ;;  %v1942_v47 = vpop.eup %1941 }
0x1802   :  { %v1944_v49 = vpop.eup %1943 }
0x1803   :  { %v1280_v50 = vadd.f32 %v1942_v47, %v1279_v45  ;;  %v1946_v54 = vpop.eup %1945 }
0x1804   :  { %v1948_v56 = vpop.eup %1947 }
0x1805   :  { %v1281_v53 = vadd.f32 %v1944_v49, %v1280_v50  ;;  %v1950_v57 = vpop.eup %1949 }
0x1806   :  { %v1952_v6 = vpop.eup %1951 }
0x1807   :  { %v1282_v55 = vadd.f32 %v1946_v54, %v1281_v53 }
0x1809   :  { %v1283_v52 = vadd.f32 %v1948_v56, %v1282_v55 }
0x180b   :  { %v1284_v58 = vadd.f32 %v1950_v57, %v1283_v52 }
0x180d   :  { %v1285_v59 = vadd.f32 %v1952_v6, %v1284_v58 }
0x180f   :  { %1953 = vrcp.f32 %v1285_v59 }
0x1819   :  { %v1954_v61 = vpop.eup %1953 }
0x181a   :  { %v1288_v62 = vmul.f32 %v1954_v61, %v1938_v43  ;;  %v1291_v63 = vmul.f32 %v1954_v61, %v1940_v44  ;;  %v1294_v0 = vmul.f32 %v1954_v61, %v1942_v47  ;;  %v1297_v5 = vmul.f32 %v1954_v61, %v1944_v49 }
0x181b   :  { %v1300_v11 = vmul.f32 %v1954_v61, %v1946_v54  ;;  %v1303_v12 = vmul.f32 %v1954_v61, %v1948_v56  ;;  %v1306_v19 = vmul.f32 %v1954_v61, %v1950_v57  ;;  %v1309_v21 = vmul.f32 %v1954_v61, %v1952_v6 }
0x181c   :  { %v1289_v1 = vmul.f32 %v1288_v62, %v2180_v29  ;;  %v1292_v3 = vmul.f32 %v1291_v63, %v2194_v48  ;;  %v1295_v9 = vmul.f32 %v1294_v0, %v2209_v4  ;;  %v1298_v16 = vmul.f32 %v1297_v5, %v2224_v24 }
0x181d   :  { %v1859_v29 = vpack.c.bf16 %v1400_v14, %v1399_v13  ;;  %v1301_v48 = vmul.f32 %v1300_v11, %v2239_v42  ;;  %v1304_v20 = vmul.f32 %v1303_v12, %v2254_v60  ;;  %v1307_v2 = vmul.f32 %v1306_v19, %v2265_v18  ;;  %v1402_v42 = vld [vmem:[%s2369_s8 + $0x18] sm:$0xff]  ;;  %v1540_v18 = vld [vmem:[%s2368_s7] ss:$0 sm:$0xff] }
0x181e   :  { %v1293_v7 = vadd.f32 %v1292_v3, %v1289_v1  ;;  %v1310_v25 = vmul.f32 %v1309_v21, %v2296_v51 }
0x181f   :  { %1860 = vmatpush3.bf16.msra.mxu0 %v1859_v29 }
0x1820   :  { %v1296_v15 = vadd.f32 %v1295_v9, %v1293_v7  ;;  %1861 = vmatprep.subr.bf16.mxu0 %v1981_v46  ;;  %v1401_v46 = vld [vmem:[%s2369_s8 + $0x10] sm:$0xff]  ;;  %s1955_s8 = scalar_lea.vmem %s1492_s3, 32 }
0x1821   :  { %v1862_v60 = vpack.c.bf16 %v1402_v42, %v1401_v46  ;;  %p1956_p0 = scmp.ne.s32.totalorder %s1492_s3, %s1955_s8  ;;  %p1961_p2 = scmp.lt.s32.totalorder %s1955_s8, %s1955_s8 }
0x1822   :  { %v1299_v17 = vadd.f32 %v1298_v16, %v1296_v15 }
0x1823   :  { %1863 = vmatpush3.bf16.msra.mxu0 %v1862_v60  ;;  %p1962_p3 = por %p1961_p2, %p1960_p1 }
0x1824   :  { %v1302_v4 = vadd.f32 %v1301_v48, %v1299_v17 }
0x1825   :  { %p1963_p4 = pnand %p1962_p3, %p1956_p0 }
0x1826   :  { %v1305_v22 = vadd.f32 %v1304_v20, %v1302_v4 }
0x1828   :  { %v1308_v23 = vadd.f32 %v1307_v2, %v1305_v22 }
0x182a   :  { %v1311_v24 = vadd.f32 %v1310_v25, %v1308_v23 }
0x182c   :  { %1324 = vrot.lane.b32.xlu1 %v1311_v24, %s1984_s19 }
0x189e   :  { %v1325_v26 = vpop.permute.xlu1 %1324 }
0x189f   :  { %1767 = vmatmul.mubr.msk.f32.vlgmr.msra.gmra.mrb[16].mxu1 %vm243_vm10, %v1325_v26 }
0x1972   :  { %v1394_v51 = vpop.f32.mrb[16].mxu1 }
0x1973   :  { %v1395_v27 = vadd.f32 %v1540_v18, %v1394_v51  ;;  %v1768_v31 = vpop.f32.mrb[17].mxu1 }
0x1975   :  { %v1398_v28 = vmax.f32 %v1395_v27, 0.0 }
0x1977   :  { %1778 = vmatmul.mubr.msk.f32.vlgmr.msra.gmra.mrb[16].mxu0 %vm243_vm10, %v1398_v28 }
0x1a4a   :  { %v1479_v10 = vpop.f32.mrb[16].mxu0 }
0x1a4b   :  { %v1480_v32 = vadd.f32 %v1542_v30, %v1479_v10  ;;  %v1779_v33 = vpop.f32.mrb[17].mxu0 }
0x1a4d   :  { %1484 = vst.msk [vmem:[#allocation2] sm:$0x3] %vm1483_vm11, %v1480_v32 }
0x1a4e   :  { %1966 = shalt.err (!%p1963_p4)
}
0x1a4f   :  { %s1967_s4 = scalar_lea.hbm %s2371_s10, 32 }
0x1a50   :  { %p1968_p5 = scmp.ne.s32.totalorder %s2371_s10, %s1967_s4  ;;  %p1971_p6 = scmp.lt.u32.totalorder %s1967_s4, %s2371_s10 }
0x1a52   :  { %p1973_p7 = pnand %p1971_p6, %p1968_p5 }
0x1a54   :  { %1976 = shalt.err (!%p1973_p7)
}
0x1a55   :  { %1494 = dma.vmem_to_hbm [thread:$0]  %s1492_s3, 32, %s2371_s10, [#allocation3]  }
0x1a56   :  { %1977 = dma.done.wait [#allocation3], 32  }
0x1a57   :  { %1978 = vsyncadd [#allocation3], 4294967264 }
0x1a58   :  { %1498 = vsyncpa [#allocation3], 1 }

</bundles_post_ra>
